<compile_context>
chip_gen: v6e
topology: v6e:2x2x1
jax: 0.10.0
libtpu: 0.0.40
codegen_flags: <defaults>
</compile_context>

<pallas_src>
import math
from functools import partial

import numpy as np
import jax
import jax.numpy as jnp
from jax.experimental import pallas as pl
from jax.experimental.pallas import tpu as pltpu


# ----------------------------- helpers (glue) -------------------------------

def keep_indices(array, indices):
    return [e for i, e in enumerate(array) if i in set(indices)]


def remove_indices(array, indices):
    return [e for i, e in enumerate(array) if i not in set(indices)]


def _round_up(x, m):
    return ((x + m - 1) // m) * m


def _pick_tile(padded_dim, target, granule):
    """Largest multiple of `granule` that divides `padded_dim` and is <= target."""
    t = min(target, padded_dim)
    t = max((t // granule) * granule, granule)
    while padded_dim % t != 0:
        t -= granule
    return t


# ------------------- Pallas kernel: tiled random projection ------------------

def _rp_kernel(scale_ref, g_ref, b_ref, o_ref, acc_ref):
    """One (tm, tn) output tile; reduction over the last grid axis (K)."""
    k = pl.program_id(2)

    @pl.when(k == 0)
    def _():
        acc_ref[...] = jnp.zeros_like(acc_ref)

    acc_ref[...] += jnp.dot(g_ref[...], b_ref[...],
                            preferred_element_type=jnp.float32)

    @pl.when(k == pl.num_programs(2) - 1)
    def _():
        # normalization folded into the finalize step (one multiply per output
        # tile, not per K step).
        o_ref[...] = (acc_ref[...] * scale_ref[0, 0]).astype(o_ref.dtype)


def _dfa_random_projection(g2d_padded, fm_padded, scale, out_dtype, tm, tn, tk):
    """(Rp, Kp) @ (Kp, Fp) -> (Rp, Fp) on the MXU, fused with normalization."""
    Rp, Kp = g2d_padded.shape
    Kp2, Fp = fm_padded.shape
    assert Kp == Kp2
    assert Rp % tm == 0 and Fp % tn == 0 and Kp % tk == 0

    grid = (Rp // tm, Fp // tn, Kp // tk)

    return pl.pallas_call(
        _rp_kernel,
        out_shape=jax.ShapeDtypeStruct((Rp, Fp), out_dtype),
        grid=grid,
        in_specs=[
            pl.BlockSpec(memory_space=pltpu.MemorySpace.SMEM),  # inv_norm scalar
            pl.BlockSpec((tm, tk), lambda i, j, k: (i, k)),     # grad_output tile
            # TODO(synk): on v7x consider pipeline_mode=pl.Buffered(3) here if
            # profiling shows exposed DMA between K steps.
            pl.BlockSpec((tk, tn), lambda i, j, k: (k, j)),     # feedback tile
        ],
        out_specs=pl.BlockSpec((tm, tn), lambda i, j, k: (i, j)),
        scratch_shapes=[pltpu.VMEM((tm, tn), jnp.float32)],
        compiler_params=pltpu.CompilerParams(
            dimension_semantics=("parallel", "parallel", "arbitrary"),
            vmem_limit_bytes=48 * 1024 * 1024,
        ),
    )(scale, g2d_padded, fm_padded)


@partial(jax.jit, static_argnames=("k_true", "f_true", "rp", "tm", "tn", "tk"))
def _rp_compute(grad_output, fm_padded, inv_norm, *, k_true, f_true, rp, tm, tn, tk):
    """Jitted: cast + fused pad + Pallas matmul + normalize + slice."""
    kp, _ = fm_padded.shape
    g2d = grad_output.reshape(-1, k_true).astype(fm_padded.dtype)
    r = g2d.shape[0]
    # jnp.pad fuses under jit into a single pass (no zero-buffer write+re-read).
    g2d_padded = jnp.pad(g2d, ((0, rp - r), (0, kp - k_true)))
    scale = jnp.asarray(inv_norm, jnp.float32).reshape(1, 1)
    out_padded = _dfa_random_projection(
        g2d_padded, fm_padded, scale, grad_output.dtype, tm, tn, tk)
    return out_padded[:r, :f_true]


# --------------------------- identity forward (no-op) ------------------------

@jax.custom_vjp
def _dfa_identity(x):
    # DFABackend.forward is semantically the identity: zero work, zero HBM
    # traffic.
    return x


def _dfa_identity_fwd(x):
    return x, None


def _dfa_identity_bwd(_, g):
    # DFABackend.backward returns (grad_output, None): cotangent passes through.
    # TODO(synk): propagating the random projection into each dfa_layer's
    # feedback_point.backward() (stateful torch-autograd hooks) has no clean
    # functional equivalent; the projection is exposed as DFA.random_projection.
    return (g,)


_dfa_identity.defvjp(_dfa_identity_fwd, _dfa_identity_bwd)


# ----------------------------- DFA module in JAX -----------------------------

class DFALayerSpec:
    """Minimal stand-in for a DFALayer: only what DFA.__init__/forward read."""

    def __init__(self, feedback_shape, batch_dims=(0,), time_dims=()):
        self.feedback_shape = tuple(feedback_shape)
        self.batch_dims = batch_dims
        self.time_dims = time_dims


class DFA:
    def __init__(self, dfa_layers, normalization=True, no_training=False,
                 batch_dims=(0,), seed=0, feedback_dtype=jnp.bfloat16):
        self.dfa_layers = dfa_layers
        self.normalization = normalization
        self.no_training = no_training
        self.batch_dims = batch_dims
        self.feedback_dtype = feedback_dtype
        self.feedback_matrix = None      # (output_size, max_feedback_size) f32
        self._fm_padded = None           # (Kpad, Fpad) feedback_dtype, zero-padded
        self._inv_norm = None            # cached device scalar
        self.max_feedback_size = 0
        self.output_size = 0
        self.initialized = False
        self._seed = seed

    def _maybe_init(self, x):
        if self.initialized or self.no_training:
            return
        self.output_size = int(np.prod(remove_indices(x.shape, self.batch_dims)))
        for layer in self.dfa_layers:
            size_dim_removed = remove_indices(layer.feedback_shape, layer.batch_dims)
            feedback_size = int(np.prod(remove_indices(size_dim_removed, layer.time_dims)))
            if feedback_size > self.max_feedback_size:
                self.max_feedback_size = feedback_size
        key = jax.random.PRNGKey(self._seed)
        # deterministic synthetic stand-in for torch.randn(output_size, max_feedback_size)
        self.feedback_matrix = jax.random.normal(
            key, (self.output_size, self.max_feedback_size), dtype=jnp.float32)
        # Stored ONCE: padded to multiples of 256 on both axes (lane-dense,
        # MXU-friendly on v6e/v7x 2x256 tiles) and cast to feedback_dtype
        # (bf16 halves the dominant HBM stream).  Padding is zero so it never
        # changes the numerics.
        kpad = _round_up(self.output_size, 256)
        fpad = _round_up(self.max_feedback_size, 256)
        fm = jnp.zeros((kpad, fpad), dtype=self.feedback_dtype)
        self._fm_padded = fm.at[:self.output_size, :self.max_feedback_size].set(
            self.feedback_matrix.astype(self.feedback_dtype))
        # Divisor is the TRUE (unpadded) feedback size, matching
        # sqrt(prod(random_projection.shape[1:])) of the original module.
        self._inv_norm = jnp.float32(
            1.0 / math.sqrt(float(self.max_feedback_size))
            if self.normalization else 1.0)
        self.initialized = True

    def forward(self, x):
        """Forward pass: identity on `x` (any shape, batch dim(s) in batch_dims)."""
        self._maybe_init(x)
        return _dfa_identity(x)

    __call__ = forward

    def _select_tiles(self, r, kp, fp):
        # tm first (cap 512), then pad Rp UP to a multiple of tm -> single
        # M step for r <= 512 (feedback matrix streamed exactly once).
        tm = min(512, _round_up(max(r, 1), 16))
        rp = _round_up(max(r, 1), tm)
        m_blocks = rp // tm
        # Large tn/tk (256 granule) -> long DMA bursts, fewer grid steps.
        tn = _pick_tile(fp, 1024, 256)
        tk = _pick_tile(kp, 2048, 256)
        # v7x megacore: if the grid would be (1, 1, K) and F is wide enough,
        # split F so both TensorCores (and both HBM paths) get work.  Skipped
        # when M already has >=2 blocks (splitting F would re-stream the grad).
        if m_blocks < 2 and fp // tn < 2 and fp >= 512:
            tn = _pick_tile(fp, fp // 2, 256)
        return rp, tm, tn, tk

    def random_projection(self, grad_output):
        """Hot path of DFABackend.backward: tiled Pallas MXU matmul + normalize."""
        assert self.initialized, "call forward() once before random_projection()"
        k_true = int(np.prod(remove_indices(grad_output.shape, self.batch_dims)))
        assert k_true == self.output_size
        r = int(np.prod(grad_output.shape)) // k_true
        kp, fp = self._fm_padded.shape
        rp, tm, tn, tk = self._select_tiles(r, kp, fp)
        return _rp_compute(grad_output, self._fm_padded, self._inv_norm,
                           k_true=k_true, f_true=self.max_feedback_size,
                           rp=rp, tm=tm, tn=tn, tk=tk)


# ----------------------------------- main ------------------------------------

if __name__ == "__main__":
    key = jax.random.PRNGKey(0)
    k_x, k_g = jax.random.split(key)

    # small NCHW input consistent with a conv-net output being wrapped by DFA
    B, C, H, W = 2, 4, 16, 16
    x = jax.random.normal(k_x, (B, C, H, W), dtype=jnp.float32)

    # one synthetic DFA layer whose feedback_shape is (B, hidden)
    hidden = 32
    layers = [DFALayerSpec(feedback_shape=(B, hidden), batch_dims=(0,), time_dims=())]

    dfa = DFA(layers, normalization=True, batch_dims=(0,), seed=0)

    # forward: true identity (no data movement, no kernel launch)
    y = jax.block_until_ready(dfa(x))
    assert y.shape == x.shape and y.dtype == x.dtype
    np.testing.assert_array_equal(np.asarray(y), np.asarray(x))

    # cotangent pass-through of the custom_vjp (matches `return (grad_output, None)`)
    gpass = jax.grad(lambda z: jnp.sum(dfa(z) * 2.0))(x)
    np.testing.assert_allclose(np.asarray(gpass), 2.0 * np.ones(x.shape, np.float32))

    # module compute hot path: random projection of a synthetic "grad_output"
    grad_output = jax.random.normal(k_g, (B, C, H, W), dtype=jnp.float32)
    rp = jax.block_until_ready(dfa.random_projection(grad_output))
    assert rp.shape == (B, hidden) and rp.dtype == grad_output.dtype

    # pure-JAX reference using the same bf16 feedback operands + f32 accumulation
    g2d = grad_output.reshape(B, -1)
    ref = jnp.dot(g2d.astype(jnp.bfloat16),
                  dfa.feedback_matrix.astype(jnp.bfloat16),
                  preferred_element_type=jnp.float32)
    ref = ref / math.sqrt(float(dfa.max_feedback_size))
    np.testing.assert_allclose(np.asarray(rp), np.asarray(ref), rtol=1e-3, atol=1e-3)

    # a taller grad (odd row count) to exercise tm selection + Rp padding path
    grad_big = jax.random.normal(k_g, (5, C, H, W), dtype=jnp.float32)
    rp_big = jax.block_until_ready(dfa.random_projection(grad_big))
    ref_big = jnp.dot(grad_big.reshape(5, -1).astype(jnp.bfloat16),
                      dfa.feedback_matrix.astype(jnp.bfloat16),
                      preferred_element_type=jnp.float32)
    ref_big = ref_big / math.sqrt(float(dfa.max_feedback_size))
    np.testing.assert_allclose(np.asarray(rp_big), np.asarray(ref_big),
                               rtol=1e-3, atol=1e-3)

    print("KERNEL_OK")
</pallas_src>

<mosaic_0001>
module attributes {stable_mosaic.version = 11 : i64} {
  func.func @_rp_kernel(%arg0: i32, %arg1: i32, %arg2: i32, %arg3: memref<1x1xf32, #tpu.memory_space<smem>>, %arg4: memref<16x1024xbf16, #tpu.memory_space<vmem>>, %arg5: memref<1024x256xbf16, #tpu.memory_space<vmem>>, %arg6: memref<16x256xf32, #tpu.memory_space<vmem>>, %arg7: memref<16x256xf32, #tpu.memory_space<vmem>>) attributes {dimension_semantics = [#tpu.dimension_semantics<parallel>, #tpu.dimension_semantics<parallel>, #tpu.dimension_semantics<arbitrary>], iteration_bounds = array<i64: 1, 1, 1>, scalar_prefetch = 0 : i64, scratch_operands = 1 : i64, tpu.core_type = #tpu.core_type<tc>, window_params = [{transform_indices = @transform_0, window_bounds = array<i64: 1, 1>}, {transform_indices = @transform_1, window_bounds = array<i64: 16, 1024>}, {transform_indices = @transform_2, window_bounds = array<i64: 1024, 256>}, {transform_indices = @transform_3, window_bounds = array<i64: 16, 256>}]} {
    %c0_i32 = arith.constant 0 : i32
    %0 = arith.cmpi eq, %arg2, %c0_i32 : i32
    %1 = arith.extui %0 : i1 to i32
    %c0_i32_0 = arith.constant 0 : i32
    %2 = arith.cmpi ne, %1, %c0_i32_0 : i32
    scf.if %2 {
      %cst_10 = arith.constant 0.000000e+00 : f32
      %12 = vector.broadcast %cst_10 : f32 to vector<16x256xf32>
      %c0_11 = arith.constant 0 : index
      %c0_12 = arith.constant 0 : index
      %13 = vector.load %arg7[%c0_11, %c0_12] : memref<16x256xf32, #tpu.memory_space<vmem>>, vector<16x256xf32>
      tpu.vector_store %arg7[%c0_11, %c0_12], %12 {strides = array<i32>} : memref<16x256xf32, #tpu.memory_space<vmem>>, vector<16x256xf32>,
    } else {
    }
    %c0 = arith.constant 0 : index
    %c0_1 = arith.constant 0 : index
    %3 = vector.load %arg7[%c0, %c0_1] : memref<16x256xf32, #tpu.memory_space<vmem>>, vector<16x256xf32>
    %c0_2 = arith.constant 0 : index
    %c0_3 = arith.constant 0 : index
    %4 = vector.load %arg4[%c0_2, %c0_3] : memref<16x1024xbf16, #tpu.memory_space<vmem>>, vector<16x1024xbf16>
    %c0_4 = arith.constant 0 : index
    %c0_5 = arith.constant 0 : index
    %5 = vector.load %arg5[%c0_4, %c0_5] : memref<1024x256xbf16, #tpu.memory_space<vmem>>, vector<1024x256xbf16>
    %cst = arith.constant dense<0.000000e+00> : vector<16x256xf32>
    %6 = tpu.matmul %4, %5, %cst {dimension_numbers = #tpu.dot_dimension_numbers<[1], [0], [0], [1], [0, 0, 1, 1], [], []>} : vector<16x1024xbf16>, vector<1024x256xbf16>, vector<16x256xf32> -> vector<16x256xf32>
    %7 = arith.addf %3, %6 : vector<16x256xf32>
    %c0_6 = arith.constant 0 : index
    %c0_7 = arith.constant 0 : index
    %8 = vector.load %arg7[%c0_6, %c0_7] : memref<16x256xf32, #tpu.memory_space<vmem>>, vector<16x256xf32>
    tpu.vector_store %arg7[%c0_6, %c0_7], %7 {strides = array<i32>} : memref<16x256xf32, #tpu.memory_space<vmem>>, vector<16x256xf32>,
    %c0_i32_8 = arith.constant 0 : i32
    %9 = arith.cmpi eq, %arg2, %c0_i32_8 : i32
    %10 = arith.extui %9 : i1 to i32
    %c0_i32_9 = arith.constant 0 : i32
    %11 = arith.cmpi ne, %10, %c0_i32_9 : i32
    scf.if %11 {
      %c0_10 = arith.constant 0 : index
      %c0_11 = arith.constant 0 : index
      %12 = vector.load %arg7[%c0_10, %c0_11] : memref<16x256xf32, #tpu.memory_space<vmem>>, vector<16x256xf32>
      %c0_12 = arith.constant 0 : index
      %c0_13 = arith.constant 0 : index
      %13 = memref.load %arg3[%c0_12, %c0_13] : memref<1x1xf32, #tpu.memory_space<smem>>
      %14 = vector.broadcast %13 : f32 to vector<16x256xf32>
      %15 = arith.mulf %12, %14 : vector<16x256xf32>
      %c0_14 = arith.constant 0 : index
      %c0_15 = arith.constant 0 : index
      %16 = vector.load %arg6[%c0_14, %c0_15] : memref<16x256xf32, #tpu.memory_space<vmem>>, vector<16x256xf32>
      tpu.vector_store %arg6[%c0_14, %c0_15], %15 {strides = array<i32>} : memref<16x256xf32, #tpu.memory_space<vmem>>, vector<16x256xf32>,
    } else {
    }
    return
  }
  func.func @transform_0(%arg0: i32, %arg1: i32, %arg2: i32) -> (i32, i32) {
    %c0_i32 = arith.constant 0 : i32
    %c0_i32_0 = arith.constant 0 : i32
    %c0_i32_1 = arith.constant 0 : i32
    return %c0_i32, %c0_i32_0 : i32, i32
  }
  func.func @transform_1(%arg0: i32, %arg1: i32, %arg2: i32) -> (i32, i32) {
    %c0_i32 = arith.constant 0 : i32
    return %arg0, %arg2 : i32, i32
  }
  func.func @transform_2(%arg0: i32, %arg1: i32, %arg2: i32) -> (i32, i32) {
    %c0_i32 = arith.constant 0 : i32
    return %arg2, %arg1 : i32, i32
  }
  func.func @transform_3(%arg0: i32, %arg1: i32, %arg2: i32) -> (i32, i32) {
    %c0_i32 = arith.constant 0 : i32
    return %arg0, %arg1 : i32, i32
  }
}

</mosaic_0001>

<bundles_post_ra>
// kernel: _rp_compute.1
= control target key start
LH: loop header
LB: loop body
LE: loop exit
PB: predicated region body
PF: predicated region fallthrough
CT: control target
= control target key end

     0   :  { %9 = vsyncpa [#allocation5], 0  ;;  %s1412_s12 = smov [#allocation4]   ;;  %s1493_s0 = inlined_call_operand.<no memory space> [shape: f32[1,1], index: 0, kind: input, shape index: {}]   ;;  %s1494_s1 = inlined_call_operand.vmem [shape: bf16[16,1024], index: 1, kind: input, shape index: {}]   ;;  %s1495_s2 = inlined_call_operand.hbm [shape: bf16[1024,256], index: 2, kind: input, shape index: {}]   ;;  %s1496_s3 = inlined_call_operand.vmem [shape: f32[16,256], index: 3, kind: output, shape index: {}]  }
   0x1   :  { %s19_s13 = sshll.u32 %s1412_s12, 4  ;;  %s20_s13 = int_to_ptr.vmem [resolvable:$true] %s19_s13 }
   0x2   :  { %s1398_s14 = scalar_lea.vmem %s20_s13, 16384  ;;  %p1403_p1 = scmp.lt.s32.totalorder %s20_s13, %s20_s13 }
   0x3   :  { %p1399_p0 = scmp.ne.s32.totalorder %s20_s13, %s1398_s14  ;;  %p1404_p2 = scmp.lt.s32.totalorder %s1398_s14, %s1398_s14 }
   0x5   :  { %p1405_p3 = por %p1404_p2, %p1403_p1 }
   0x7   :  { %p1406_p4 = pnand %p1405_p3, %p1399_p0 }
   0x9   :  { %1409 = shalt.err (!%p1406_p4)
}
   0xa   :  { %s1413_s15 = smov 128   ;;  %s1414_s16 = smov 8  }
   0xb   :  { %25 = dma.hbm_to_vmem [thread:$0]  %s1495_s2, 16384, %s20_s13, [#allocation5], %s1413_s15, %s1413_s15, %s1414_s16  }
   0xc   :  { %1410 = dma.done.wait [#allocation5], 16384  }
   0xd   :  { %1411 = vsyncadd [#allocation5], 4294950912  ;;  %v1198_v0 = vld [vmem:[#allocation4 + $0x74] ss:$8 sps:$4 sm:$0xff]   ;;  %v1202_v2 = vld [vmem:[#allocation4 + $0x70] ss:$8 sps:$4 sm:$0xff]  }
   0xe   :  { %v1200_v1 = vld [vmem:[#allocation4 + $0x174] ss:$8 sps:$4 sm:$0xff]   ;;  %857 = vmatprep.subr.bf16.mxu0 %v1198_v0  ;;  %v1203_v3 = vld [vmem:[#allocation4 + $0x170] ss:$8 sps:$4 sm:$0xff]   ;;  %v1204_v4 = vld [vmem:[#allocation4 + $0x64] ss:$8 sps:$4 sm:$0xff]  }
   0xf   :  { %900 = vmatprep.subr.bf16.mxu1 %v1200_v1  ;;  %858 = vmatpush1.bf16.msra.mxu0 %v1202_v2  ;;  %v1206_v5 = vld [vmem:[#allocation4 + $0x164] ss:$8 sps:$4 sm:$0xff]   ;;  %v1208_v6 = vld [vmem:[#allocation4 + $0x60] ss:$8 sps:$4 sm:$0xff]   ;;  %v1210_v8 = vld [vmem:[#allocation4 + $0x54] ss:$8 sps:$4 sm:$0xff]  }
  0x10   :  { %901 = vmatpush1.bf16.msra.mxu1 %v1203_v3  ;;  %859 = vmatprep.subr.bf16.mxu0 %v1204_v4  ;;  %v1209_v7 = vld [vmem:[#allocation4 + $0x160] ss:$8 sps:$4 sm:$0xff]   ;;  %v1212_v9 = vld [vmem:[#allocation4 + $0x154] ss:$8 sps:$4 sm:$0xff]   ;;  %v1214_v10 = vld [vmem:[#allocation4 + $0x50] ss:$8 sps:$4 sm:$0xff]  }
  0x11   :  { %902 = vmatprep.subr.bf16.mxu1 %v1206_v5  ;;  %v1215_v11 = vld [vmem:[#allocation4 + $0x150] ss:$8 sps:$4 sm:$0xff]   ;;  %v1216_v12 = vld [vmem:[#allocation4 + $0x44] ss:$8 sps:$4 sm:$0xff]   ;;  %v1220_v14 = vld [vmem:[#allocation4 + $0x40] ss:$8 sps:$4 sm:$0xff]  }
  0x12   :  { %v1218_v13 = vld [vmem:[#allocation4 + $0x144] ss:$8 sps:$4 sm:$0xff]   ;;  %v1221_v15 = vld [vmem:[#allocation4 + $0x140] ss:$8 sps:$4 sm:$0xff]   ;;  %v1222_v16 = vld [vmem:[#allocation4 + $0x34] ss:$8 sps:$4 sm:$0xff]  }
  0x13   :  { %860 = vmatpush1.bf16.msra.mxu0 %v1208_v6  ;;  %v1224_v17 = vld [vmem:[#allocation4 + $0x134] ss:$8 sps:$4 sm:$0xff]   ;;  %v1226_v18 = vld [vmem:[#allocation4 + $0x30] ss:$8 sps:$4 sm:$0xff]   ;;  %v1228_v20 = vld [vmem:[#allocation4 + $0x24] ss:$8 sps:$4 sm:$0xff]  }
  0x14   :  { %903 = vmatpush1.bf16.msra.mxu1 %v1209_v7  ;;  %861 = vmatprep.subr.bf16.mxu0 %v1210_v8  ;;  %v1227_v19 = vld [vmem:[#allocation4 + $0x130] ss:$8 sps:$4 sm:$0xff]   ;;  %v1230_v21 = vld [vmem:[#allocation4 + $0x124] ss:$8 sps:$4 sm:$0xff]   ;;  %v1232_v22 = vld [vmem:[#allocation4 + $0x20] ss:$8 sps:$4 sm:$0xff]  }
  0x15   :  { %904 = vmatprep.subr.bf16.mxu1 %v1212_v9  ;;  %v1233_v23 = vld [vmem:[#allocation4 + $0x120] ss:$8 sps:$4 sm:$0xff]   ;;  %v1234_v24 = vld [vmem:[#allocation4 + $0x14] ss:$8 sps:$4 sm:$0xff]   ;;  %v1238_v26 = vld [vmem:[#allocation4 + $0x10] ss:$8 sps:$4 sm:$0xff]  }
  0x16   :  { %v1236_v25 = vld [vmem:[#allocation4 + $0x114] ss:$8 sps:$4 sm:$0xff]   ;;  %v1239_v27 = vld [vmem:[#allocation4 + $0x110] ss:$8 sps:$4 sm:$0xff]   ;;  %v1240_v28 = vld [vmem:[#allocation4 + $0x4] ss:$8 sps:$4 sm:$0xff]  }
  0x17   :  { %862 = vmatpush1.bf16.msra.mxu0 %v1214_v10  ;;  %v1242_v29 = vld [vmem:[#allocation4 + $0x104] ss:$8 sps:$4 sm:$0xff]   ;;  %v1244_v30 = vld [vmem:[#allocation4] ss:$8 sps:$4 sm:$0xff]   ;;  %v1246_v32 = vld [vmem:[#allocation4 + $0xf4] ss:$8 sps:$4 sm:$0xff]  }
  0x18   :  { %905 = vmatpush1.bf16.msra.mxu1 %v1215_v11  ;;  %863 = vmatprep.subr.bf16.mxu0 %v1216_v12  ;;  %v1245_v31 = vld [vmem:[#allocation4 + $0x100] ss:$8 sps:$4 sm:$0xff]   ;;  %v1248_v33 = vld [vmem:[#allocation4 + $0x1f4] ss:$8 sps:$4 sm:$0xff]   ;;  %v1250_v34 = vld [vmem:[#allocation4 + $0xf0] ss:$8 sps:$4 sm:$0xff]  }
  0x19   :  { %906 = vmatprep.subr.bf16.mxu1 %v1218_v13  ;;  %v1251_v35 = vld [vmem:[#allocation4 + $0x1f0] ss:$8 sps:$4 sm:$0xff]   ;;  %v1252_v36 = vld [vmem:[#allocation4 + $0xe4] ss:$8 sps:$4 sm:$0xff]   ;;  %v1256_v38 = vld [vmem:[#allocation4 + $0xe0] ss:$8 sps:$4 sm:$0xff]  }
  0x1a   :  { %v1254_v37 = vld [vmem:[#allocation4 + $0x1e4] ss:$8 sps:$4 sm:$0xff]   ;;  %v1257_v39 = vld [vmem:[#allocation4 + $0x1e0] ss:$8 sps:$4 sm:$0xff]   ;;  %v1258_v40 = vld [vmem:[#allocation4 + $0xd4] ss:$8 sps:$4 sm:$0xff]  }
  0x1b   :  { %864 = vmatpush1.bf16.msra.mxu0 %v1220_v14  ;;  %v1260_v41 = vld [vmem:[#allocation4 + $0x1d4] ss:$8 sps:$4 sm:$0xff]   ;;  %v1262_v42 = vld [vmem:[#allocation4 + $0xd0] ss:$8 sps:$4 sm:$0xff]   ;;  %v1264_v44 = vld [vmem:[#allocation4 + $0xc4] ss:$8 sps:$4 sm:$0xff]  }
  0x1c   :  { %907 = vmatpush1.bf16.msra.mxu1 %v1221_v15  ;;  %865 = vmatprep.subr.bf16.mxu0 %v1222_v16  ;;  %v1263_v43 = vld [vmem:[#allocation4 + $0x1d0] ss:$8 sps:$4 sm:$0xff]   ;;  %v1266_v45 = vld [vmem:[#allocation4 + $0x1c4] ss:$8 sps:$4 sm:$0xff]   ;;  %v1268_v46 = vld [vmem:[#allocation4 + $0xc0] ss:$8 sps:$4 sm:$0xff]  }
  0x1d   :  { %908 = vmatprep.subr.bf16.mxu1 %v1224_v17  ;;  %v1269_v47 = vld [vmem:[#allocation4 + $0x1c0] ss:$8 sps:$4 sm:$0xff]   ;;  %v1270_v52 = vld [vmem:[#allocation4 + $0xb4] ss:$8 sps:$4 sm:$0xff]   ;;  %v1274_v56 = vld [vmem:[#allocation4 + $0xb0] ss:$8 sps:$4 sm:$0xff]  }
  0x1e   :  { %v41_v48 = vld [vmem:[%s1494_s1] sm:$0xff]  ;;  %v42_v50 = vld [vmem:[%s1494_s1 + $0x8] sm:$0xff]  ;;  %v1272_v54 = vld [vmem:[#allocation4 + $0x1b4] ss:$8 sps:$4 sm:$0xff]  }
  0x1f   :  { %866 = vmatpush1.bf16.msra.mxu0 %v1226_v18  ;;  %v45_v49 = vld [vmem:[%s1494_s1 + $0x20] sm:$0xff]  ;;  %v46_v51 = vld [vmem:[%s1494_s1 + $0x28] sm:$0xff]  ;;  %v1275_v57 = vld [vmem:[#allocation4 + $0x1b0] ss:$8 sps:$4 sm:$0xff]  }
  0x20   :  { %909 = vmatpush1.bf16.msra.mxu1 %v1227_v19  ;;  %867 = vmatprep.subr.bf16.mxu0 %v1228_v20  ;;  %v1060_v53 = vcombine.high %v41_v48, %v45_v49  ;;  %v1062_v55 = vcombine.high %v42_v50, %v46_v51  ;;  %v1276_v58 = vld [vmem:[#allocation4 + $0xa4] ss:$8 sps:$4 sm:$0xff]   ;;  %v1280_v60 = vld [vmem:[#allocation4 + $0xa0] ss:$8 sps:$4 sm:$0xff]   ;;  %v1282_v62 = vld [vmem:[#allocation4 + $0x94] ss:$8 sps:$4 sm:$0xff]   ;;  %v1059_v8 = vcombine.low %v41_v48, %v45_v49 }
  0x21   :  { %910 = vmatprep.subr.bf16.mxu1 %v1230_v21  ;;  %v1278_v59 = vld [vmem:[#allocation4 + $0x1a4] ss:$8 sps:$4 sm:$0xff]   ;;  %v1281_v61 = vld [vmem:[#allocation4 + $0x1a0] ss:$8 sps:$4 sm:$0xff]   ;;  %v1284_v63 = vld [vmem:[#allocation4 + $0x194] ss:$8 sps:$4 sm:$0xff]   ;;  %v1061_v9 = vcombine.low %v42_v50, %v46_v51 }
  0x22   :  { %889 = vmatprep.mubr.bf16.mxu0 %v1060_v53  ;;  %932 = vmatprep.mubr.bf16.mxu1 %v1062_v55  ;;  %v1286_v0 = vld [vmem:[#allocation4 + $0x90] ss:$8 sps:$4 sm:$0xff]   ;;  %v1288_v2 = vld [vmem:[#allocation4 + $0x84] ss:$8 sps:$4 sm:$0xff]   ;;  %v1292_v4 = vld [vmem:[#allocation4 + $0x80] ss:$8 sps:$4 sm:$0xff]  }
  0x23   :  { %868 = vmatpush1.bf16.msra.mxu0 %v1232_v22  ;;  %v1287_v1 = vld [vmem:[#allocation4 + $0x190] ss:$8 sps:$4 sm:$0xff]   ;;  %v1290_v3 = vld [vmem:[#allocation4 + $0x184] ss:$8 sps:$4 sm:$0xff]   ;;  %v1293_v5 = vld [vmem:[#allocation4 + $0x180] ss:$8 sps:$4 sm:$0xff]  }
  0x24   :  { %911 = vmatpush1.bf16.msra.mxu1 %v1233_v23  ;;  %869 = vmatprep.subr.bf16.mxu0 %v1234_v24  ;;  %v1296_v6 = vld [vmem:[#allocation4 + $0x274] ss:$8 sps:$4 sm:$0xff]   ;;  %v1294_v10 = vld [vmem:[#allocation4 + $0x270] ss:$8 sps:$4 sm:$0xff]   ;;  %v1302_v12 = vld [vmem:[#allocation4 + $0x264] ss:$8 sps:$4 sm:$0xff]  }
  0x25   :  { %912 = vmatprep.subr.bf16.mxu1 %v1236_v25  ;;  %v1299_v7 = vld [vmem:[#allocation4 + $0x374] ss:$8 sps:$4 sm:$0xff]   ;;  %v1297_v11 = vld [vmem:[#allocation4 + $0x370] ss:$8 sps:$4 sm:$0xff]   ;;  %v1305_v13 = vld [vmem:[#allocation4 + $0x364] ss:$8 sps:$4 sm:$0xff]  }
  0x26   :  { %v1300_v14 = vld [vmem:[#allocation4 + $0x260] ss:$8 sps:$4 sm:$0xff]   ;;  %v1308_v16 = vld [vmem:[#allocation4 + $0x254] ss:$8 sps:$4 sm:$0xff]   ;;  %v1306_v18 = vld [vmem:[#allocation4 + $0x250] ss:$8 sps:$4 sm:$0xff]  }
  0x27   :  { %870 = vmatpush1.bf16.msra.mxu0 %v1238_v26  ;;  %v1303_v15 = vld [vmem:[#allocation4 + $0x360] ss:$8 sps:$4 sm:$0xff]   ;;  %v1311_v17 = vld [vmem:[#allocation4 + $0x354] ss:$8 sps:$4 sm:$0xff]   ;;  %v1309_v19 = vld [vmem:[#allocation4 + $0x350] ss:$8 sps:$4 sm:$0xff]  }
  0x28   :  { %913 = vmatpush1.bf16.msra.mxu1 %v1239_v27  ;;  %871 = vmatprep.subr.bf16.mxu0 %v1240_v28  ;;  %v1314_v20 = vld [vmem:[#allocation4 + $0x244] ss:$8 sps:$4 sm:$0xff]   ;;  %v1312_v22 = vld [vmem:[#allocation4 + $0x240] ss:$8 sps:$4 sm:$0xff]   ;;  %v1320_v24 = vld [vmem:[#allocation4 + $0x234] ss:$8 sps:$4 sm:$0xff]  }
  0x29   :  { %914 = vmatprep.subr.bf16.mxu1 %v1242_v29  ;;  %v1317_v21 = vld [vmem:[#allocation4 + $0x344] ss:$8 sps:$4 sm:$0xff]   ;;  %v1315_v23 = vld [vmem:[#allocation4 + $0x340] ss:$8 sps:$4 sm:$0xff]   ;;  %v1323_v25 = vld [vmem:[#allocation4 + $0x334] ss:$8 sps:$4 sm:$0xff]  }
  0x2a   :  { %v1318_v26 = vld [vmem:[#allocation4 + $0x230] ss:$8 sps:$4 sm:$0xff]   ;;  %v1326_v28 = vld [vmem:[#allocation4 + $0x224] ss:$8 sps:$4 sm:$0xff]   ;;  %v1351_v53 = vld [vmem:[#allocation4 + $0x3e0] ss:$8 sps:$4 sm:$0xff]  }
  0x2b   :  { %872 = vmatpush1.bf16.msra.mxu0 %v1244_v30  ;;  %v1321_v27 = vld [vmem:[#allocation4 + $0x330] ss:$8 sps:$4 sm:$0xff]   ;;  %v1329_v29 = vld [vmem:[#allocation4 + $0x324] ss:$8 sps:$4 sm:$0xff]   ;;  %v1324_v30 = vld [vmem:[#allocation4 + $0x220] ss:$8 sps:$4 sm:$0xff]  }
  0x2c   :  { %915 = vmatpush1.bf16.msra.mxu1 %v1245_v31  ;;  %873 = vmatprep.subr.bf16.mxu0 %v1246_v32  ;;  %v1327_v31 = vld [vmem:[#allocation4 + $0x320] ss:$8 sps:$4 sm:$0xff]   ;;  %v1332_v32 = vld [vmem:[#allocation4 + $0x214] ss:$8 sps:$4 sm:$0xff]   ;;  %v1342_v48 = vld [vmem:[#allocation4 + $0x2f0] ss:$8 sps:$4 sm:$0xff]  }
  0x2d   :  { %916 = vmatprep.subr.bf16.mxu1 %v1248_v33  ;;  %v1335_v33 = vld [vmem:[#allocation4 + $0x314] ss:$8 sps:$4 sm:$0xff]   ;;  %v1345_v49 = vld [vmem:[#allocation4 + $0x3f0] ss:$8 sps:$4 sm:$0xff]   ;;  %v1350_v50 = vld [vmem:[#allocation4 + $0x2e4] ss:$8 sps:$4 sm:$0xff]  }
  0x2e   :  { %v1353_v51 = vld [vmem:[#allocation4 + $0x3e4] ss:$8 sps:$4 sm:$0xff]   ;;  %v1359_v55 = vld [vmem:[#allocation4 + $0x3d4] ss:$8 sps:$4 sm:$0xff]  }
  0x2f   :  { %874 = vmatpush2.bf16.msra.mxu0 %v1250_v34  ;;  %v1453_v34 = vld [vmem:[%s1494_s1 + $0x10] sm:$0xff] }
  0x30   :  { %917 = vmatpush2.bf16.msra.mxu1 %v1251_v35  ;;  %875 = vmatprep.subr.bf16.mxu0 %v1252_v36  ;;  %v1458_v35 = vld [vmem:[%s1494_s1 + $0x30] sm:$0xff]  ;;  %v1463_v36 = vld [vmem:[%s1494_s1 + $0x18] sm:$0xff] }
  0x31   :  { %918 = vmatprep.subr.bf16.mxu1 %v1254_v37  ;;  %v1468_v37 = vld [vmem:[%s1494_s1 + $0x38] sm:$0xff] }
  0x33   :  { %876 = vmatpush2.bf16.msra.mxu0 %v1256_v38  ;;  %v1330_v38 = vld [vmem:[#allocation4 + $0x210] ss:$8 sps:$4 sm:$0xff]  }
  0x34   :  { %919 = vmatpush2.bf16.msra.mxu1 %v1257_v39  ;;  %877 = vmatprep.subr.bf16.mxu0 %v1258_v40  ;;  %v1333_v39 = vld [vmem:[#allocation4 + $0x310] ss:$8 sps:$4 sm:$0xff]   ;;  %v1064_v40 = vcombine.high %v1453_v34, %v1458_v35 }
  0x35   :  { %920 = vmatprep.subr.bf16.mxu1 %v1260_v41  ;;  %v1338_v41 = vld [vmem:[#allocation4 + $0x204] ss:$8 sps:$4 sm:$0xff]  }
  0x37   :  { %878 = vmatpush2.bf16.msra.mxu0 %v1262_v42  ;;  %v1341_v42 = vld [vmem:[#allocation4 + $0x304] ss:$8 sps:$4 sm:$0xff]  }
  0x38   :  { %921 = vmatpush2.bf16.msra.mxu1 %v1263_v43  ;;  %879 = vmatprep.subr.bf16.mxu0 %v1264_v44  ;;  %v1066_v43 = vcombine.high %v1463_v36, %v1468_v37  ;;  %v1336_v44 = vld [vmem:[#allocation4 + $0x200] ss:$8 sps:$4 sm:$0xff]  }
  0x39   :  { %922 = vmatprep.subr.bf16.mxu1 %v1266_v45  ;;  %v1339_v45 = vld [vmem:[#allocation4 + $0x300] ss:$8 sps:$4 sm:$0xff]  }
  0x3b   :  { %880 = vmatpush2.bf16.msra.mxu0 %v1268_v46  ;;  %v1344_v46 = vld [vmem:[#allocation4 + $0x2f4] ss:$8 sps:$4 sm:$0xff]  }
  0x3c   :  { %923 = vmatpush2.bf16.msra.mxu1 %v1269_v47  ;;  %881 = vmatprep.subr.bf16.mxu0 %v1270_v52  ;;  %v1347_v47 = vld [vmem:[#allocation4 + $0x3f4] ss:$8 sps:$4 sm:$0xff]   ;;  %v1348_v52 = vld [vmem:[#allocation4 + $0x2e0] ss:$8 sps:$4 sm:$0xff]  }
  0x3d   :  { %924 = vmatprep.subr.bf16.mxu1 %v1272_v54  ;;  %v1356_v54 = vld [vmem:[#allocation4 + $0x2d4] ss:$8 sps:$4 sm:$0xff]  }
  0x3f   :  { %882 = vmatpush2.bf16.msra.mxu0 %v1274_v56  ;;  %v1354_v56 = vld [vmem:[#allocation4 + $0x2d0] ss:$8 sps:$4 sm:$0xff]  }
  0x40   :  { %925 = vmatpush2.bf16.msra.mxu1 %v1275_v57  ;;  %883 = vmatprep.subr.bf16.mxu0 %v1276_v58  ;;  %v1357_v57 = vld [vmem:[#allocation4 + $0x3d0] ss:$8 sps:$4 sm:$0xff]   ;;  %v1362_v58 = vld [vmem:[#allocation4 + $0x2c4] ss:$8 sps:$4 sm:$0xff]  }
  0x41   :  { %926 = vmatprep.subr.bf16.mxu1 %v1278_v59  ;;  %v1365_v59 = vld [vmem:[#allocation4 + $0x3c4] ss:$8 sps:$4 sm:$0xff]  }
  0x43   :  { %884 = vmatpush2.bf16.msra.mxu0 %v1280_v60  ;;  %v1360_v60 = vld [vmem:[#allocation4 + $0x2c0] ss:$8 sps:$4 sm:$0xff]  }
  0x44   :  { %927 = vmatpush2.bf16.msra.mxu1 %v1281_v61  ;;  %885 = vmatprep.subr.bf16.mxu0 %v1282_v62  ;;  %v1363_v61 = vld [vmem:[#allocation4 + $0x3c0] ss:$8 sps:$4 sm:$0xff]   ;;  %v1368_v62 = vld [vmem:[#allocation4 + $0x2b4] ss:$8 sps:$4 sm:$0xff]  }
  0x45   :  { %928 = vmatprep.subr.bf16.mxu1 %v1284_v63  ;;  %v1371_v63 = vld [vmem:[#allocation4 + $0x3b4] ss:$8 sps:$4 sm:$0xff]  }
  0x47   :  { %886 = vmatpush2.bf16.msra.mxu0 %v1286_v0  ;;  %v1366_v0 = vld [vmem:[#allocation4 + $0x2b0] ss:$8 sps:$4 sm:$0xff]  }
  0x48   :  { %929 = vmatpush2.bf16.msra.mxu1 %v1287_v1  ;;  %887 = vmatprep.subr.bf16.mxu0 %v1288_v2  ;;  %v1369_v1 = vld [vmem:[#allocation4 + $0x3b0] ss:$8 sps:$4 sm:$0xff]   ;;  %v1374_v2 = vld [vmem:[#allocation4 + $0x2a4] ss:$8 sps:$4 sm:$0xff]  }
  0x49   :  { %930 = vmatprep.subr.bf16.mxu1 %v1290_v3  ;;  %v1377_v3 = vld [vmem:[#allocation4 + $0x3a4] ss:$8 sps:$4 sm:$0xff]  }
  0x4b   :  { %888 = vmatpush2.bf16.msra.mxu0 %v1292_v4  ;;  %v1372_v4 = vld [vmem:[#allocation4 + $0x2a0] ss:$8 sps:$4 sm:$0xff]  }
  0x4c   :  { %931 = vmatpush2.bf16.msra.mxu1 %v1293_v5  ;;  %943 = vmatprep.subr.bf16.mxu0 %v1296_v6  ;;  %v1375_v5 = vld [vmem:[#allocation4 + $0x3a0] ss:$8 sps:$4 sm:$0xff]   ;;  %v1380_v6 = vld [vmem:[#allocation4 + $0x294] ss:$8 sps:$4 sm:$0xff]  }
  0x4d   :  { %986 = vmatprep.subr.bf16.mxu1 %v1299_v7  ;;  %v1383_v7 = vld [vmem:[#allocation4 + $0x394] ss:$8 sps:$4 sm:$0xff]  }
  0x4e   :  { %890 = vmatmul.mubr.bf16.vlgmr.msra.gmra.mxu0 %v1059_v8  ;;  %v1378_v8 = vld [vmem:[#allocation4 + $0x290] ss:$8 sps:$4 sm:$0xff]  }
  0x4f   :  { %933 = vmatmul.mubr.bf16.vlgmr.msra.gmra.mxu1 %v1061_v9  ;;  %944 = vmatpush1.bf16.msra.mxu0 %v1294_v10  ;;  %v1381_v9 = vld [vmem:[#allocation4 + $0x390] ss:$8 sps:$4 sm:$0xff]   ;;  %v1386_v10 = vld [vmem:[#allocation4 + $0x284] ss:$8 sps:$4 sm:$0xff]  }
  0x50   :  { %987 = vmatpush1.bf16.msra.mxu1 %v1297_v11  ;;  %945 = vmatprep.subr.bf16.mxu0 %v1302_v12  ;;  %v1389_v11 = vld [vmem:[#allocation4 + $0x384] ss:$8 sps:$4 sm:$0xff]   ;;  %v1384_v12 = vld [vmem:[#allocation4 + $0x280] ss:$8 sps:$4 sm:$0xff]  }
  0x51   :  { %988 = vmatprep.subr.bf16.mxu1 %v1305_v13  ;;  %975 = vmatprep.mubr.bf16.mxu0 %v1064_v40  ;;  %v1387_v13 = vld [vmem:[#allocation4 + $0x380] ss:$8 sps:$4 sm:$0xff]  }
  0x52   :  { %1018 = vmatprep.mubr.bf16.mxu1 %v1066_v43 }
  0x53   :  { %946 = vmatpush1.bf16.msra.mxu0 %v1300_v14  ;;  %v1063_v14 = vcombine.low %v1453_v34, %v1458_v35 }
  0x54   :  { %989 = vmatpush1.bf16.msra.mxu1 %v1303_v15  ;;  %947 = vmatprep.subr.bf16.mxu0 %v1308_v16  ;;  %v1065_v15 = vcombine.low %v1463_v36, %v1468_v37 }
  0x55   :  { %990 = vmatprep.subr.bf16.mxu1 %v1311_v17 }
  0x57   :  { %948 = vmatpush1.bf16.msra.mxu0 %v1306_v18 }
  0x58   :  { %991 = vmatpush1.bf16.msra.mxu1 %v1309_v19  ;;  %949 = vmatprep.subr.bf16.mxu0 %v1314_v20 }
  0x59   :  { %992 = vmatprep.subr.bf16.mxu1 %v1317_v21 }
  0x5b   :  { %950 = vmatpush1.bf16.msra.mxu0 %v1312_v22 }
  0x5c   :  { %993 = vmatpush1.bf16.msra.mxu1 %v1315_v23  ;;  %951 = vmatprep.subr.bf16.mxu0 %v1320_v24 }
  0x5d   :  { %994 = vmatprep.subr.bf16.mxu1 %v1323_v25 }
  0x5f   :  { %952 = vmatpush1.bf16.msra.mxu0 %v1318_v26 }
  0x60   :  { %995 = vmatpush1.bf16.msra.mxu1 %v1321_v27  ;;  %953 = vmatprep.subr.bf16.mxu0 %v1326_v28 }
  0x61   :  { %996 = vmatprep.subr.bf16.mxu1 %v1329_v29  ;;  %v1045_v29 = vstv %s1493_s0 }
  0x63   :  { %954 = vmatpush1.bf16.msra.mxu0 %v1324_v30 }
  0x64   :  { %997 = vmatpush1.bf16.msra.mxu1 %v1327_v31  ;;  %955 = vmatprep.subr.bf16.mxu0 %v1332_v32 }
  0x65   :  { %998 = vmatprep.subr.bf16.mxu1 %v1335_v33 }
  0x67   :  { %956 = vmatpush1.bf16.msra.mxu0 %v1330_v38 }
  0x68   :  { %999 = vmatpush1.bf16.msra.mxu1 %v1333_v39  ;;  %957 = vmatprep.subr.bf16.mxu0 %v1338_v41 }
  0x69   :  { %1000 = vmatprep.subr.bf16.mxu1 %v1341_v42 }
  0x6b   :  { %958 = vmatpush1.bf16.msra.mxu0 %v1336_v44 }
  0x6c   :  { %1001 = vmatpush1.bf16.msra.mxu1 %v1339_v45  ;;  %959 = vmatprep.subr.bf16.mxu0 %v1344_v46 }
  0x6d   :  { %1002 = vmatprep.subr.bf16.mxu1 %v1347_v47 }
  0x6f   :  { %960 = vmatpush2.bf16.msra.mxu0 %v1342_v48 }
  0x70   :  { %1003 = vmatpush2.bf16.msra.mxu1 %v1345_v49  ;;  %961 = vmatprep.subr.bf16.mxu0 %v1350_v50 }
  0x71   :  { %1004 = vmatprep.subr.bf16.mxu1 %v1353_v51 }
  0x73   :  { %962 = vmatpush2.bf16.msra.mxu0 %v1348_v52 }
  0x74   :  { %1005 = vmatpush2.bf16.msra.mxu1 %v1351_v53  ;;  %963 = vmatprep.subr.bf16.mxu0 %v1356_v54 }
  0x75   :  { %1006 = vmatprep.subr.bf16.mxu1 %v1359_v55 }
  0x77   :  { %964 = vmatpush2.bf16.msra.mxu0 %v1354_v56 }
  0x78   :  { %1007 = vmatpush2.bf16.msra.mxu1 %v1357_v57  ;;  %965 = vmatprep.subr.bf16.mxu0 %v1362_v58 }
  0x79   :  { %1008 = vmatprep.subr.bf16.mxu1 %v1365_v59 }
  0x7b   :  { %966 = vmatpush2.bf16.msra.mxu0 %v1360_v60 }
  0x7c   :  { %1009 = vmatpush2.bf16.msra.mxu1 %v1363_v61  ;;  %967 = vmatprep.subr.bf16.mxu0 %v1368_v62 }
  0x7d   :  { %1010 = vmatprep.subr.bf16.mxu1 %v1371_v63 }
  0x7f   :  { %968 = vmatpush2.bf16.msra.mxu0 %v1366_v0 }
  0x80   :  { %1011 = vmatpush2.bf16.msra.mxu1 %v1369_v1  ;;  %969 = vmatprep.subr.bf16.mxu0 %v1374_v2 }
  0x81   :  { %1012 = vmatprep.subr.bf16.mxu1 %v1377_v3 }
  0x83   :  { %970 = vmatpush2.bf16.msra.mxu0 %v1372_v4 }
  0x84   :  { %1013 = vmatpush2.bf16.msra.mxu1 %v1375_v5  ;;  %971 = vmatprep.subr.bf16.mxu0 %v1380_v6 }
  0x85   :  { %1014 = vmatprep.subr.bf16.mxu1 %v1383_v7 }
  0x87   :  { %972 = vmatpush2.bf16.msra.mxu0 %v1378_v8 }
  0x88   :  { %1015 = vmatpush2.bf16.msra.mxu1 %v1381_v9  ;;  %973 = vmatprep.subr.bf16.mxu0 %v1386_v10 }
  0x89   :  { %1016 = vmatprep.subr.bf16.mxu1 %v1389_v11 }
  0x8b   :  { %974 = vmatpush2.bf16.msra.mxu0 %v1384_v12 }
  0x8c   :  { %1017 = vmatpush2.bf16.msra.mxu1 %v1387_v13 }
  0x8e   :  { %976 = vmatmul.mubr.bf16.vlgmr.msra.gmra.mxu0 %v1063_v14 }
  0x8f   :  { %1019 = vmatmul.mubr.bf16.vlgmr.msra.gmra.mxu1 %v1065_v15 }
 0x10e   :  { %v891_v16 = vpop.f32.mrf.mxu0 }
 0x10f   :  { %v934_v17 = vpop.f32.mrf.mxu1 }
 0x110   :  { %v893_v18 = vpop.f32.mrf.mxu0  ;;  %v935_v24 = vadd.f32 %v934_v17, %v891_v16 }
 0x111   :  { %v936_v19 = vpop.f32.mrf.mxu1 }
 0x112   :  { %v895_v20 = vpop.f32.mrf.mxu0  ;;  %v937_v27 = vadd.f32 %v936_v19, %v893_v18 }
 0x113   :  { %v938_v21 = vpop.f32.mrf.mxu1 }
 0x114   :  { %v897_v22 = vpop.f32.mrf.mxu0  ;;  %v939_v32 = vadd.f32 %v938_v21, %v895_v20 }
 0x115   :  { %v940_v23 = vpop.f32.mrf.mxu1 }
 0x116   :  { %v941_v37 = vadd.f32 %v940_v23, %v897_v22 }
 0x14e   :  { %v977_v25 = vpop.f32.mrf.mxu0 }
 0x14f   :  { %v1020_v26 = vpop.f32.mrf.mxu1  ;;  %v978_v28 = vadd.f32 %v977_v25, %v935_v24 }
 0x150   :  { %v979_v30 = vpop.f32.mrf.mxu0 }
 0x151   :  { %v1022_v31 = vpop.f32.mrf.mxu1  ;;  %v1021_v33 = vadd.f32 %v1020_v26, %v978_v28  ;;  %v980_v34 = vadd.f32 %v979_v30, %v937_v27 }
 0x152   :  { %v981_v35 = vpop.f32.mrf.mxu0 }
 0x153   :  { %v1024_v36 = vpop.f32.mrf.mxu1  ;;  %v1046_v38 = vmul.f32 %v1045_v29, %v1021_v33  ;;  %v1023_v39 = vadd.f32 %v1022_v31, %v980_v34  ;;  %v982_v40 = vadd.f32 %v981_v35, %v939_v32 }
 0x154   :  { %v983_v41 = vpop.f32.mrf.mxu0 }
 0x155   :  { %1050 = vst [vmem:[%s1496_s3] sm:$0xff] %v1046_v38  ;;  %v1047_v42 = vmul.f32 %v1045_v29, %v1023_v39  ;;  %v1025_v43 = vadd.f32 %v1024_v36, %v982_v40  ;;  %v984_v44 = vadd.f32 %v983_v41, %v941_v37  ;;  %v1026_v45 = vpop.f32.mrf.mxu1 }
 0x157   :  { %1051 = vst [vmem:[%s1496_s3 + $0x8] sm:$0xff] %v1047_v42  ;;  %v1048_v46 = vmul.f32 %v1045_v29, %v1025_v43  ;;  %v1027_v47 = vadd.f32 %v1026_v45, %v984_v44 }
 0x159   :  { %1052 = vst [vmem:[%s1496_s3 + $0x10] sm:$0xff] %v1048_v46  ;;  %v1049_v48 = vmul.f32 %v1045_v29, %v1027_v47 }
 0x15b   :  { %1053 = vst [vmem:[%s1496_s3 + $0x18] sm:$0xff] %v1049_v48 }
 0x15c   :  { %1058 = vsyncpa [#allocation5], 1 }

</bundles_post_ra>
